<compile_context>
chip_gen: v5e
topology: v5e:2x2
jax: 0.10.0
libtpu: 0.0.40
codegen_flags: <defaults>
</compile_context>

<pallas_src>
import functools

import jax
import jax.numpy as jnp
from jax.experimental import pallas as pl
from jax.experimental.pallas import tpu as pltpu

LANE = 128


def _round_up(n, m):
    return ((n + m - 1) // m) * m


def _pad2(a, rows, cols):
    return jnp.pad(a, ((0, rows - a.shape[0]), (0, cols - a.shape[1])))


def _row_normalize(adj):
    deg = adj.sum(axis=1, keepdims=True)
    return adj / jnp.maximum(deg, 1.0)


def _fused_graphsage_kernel(a1_ref, a2_ref, x_ref,
                            ws1_ref, wn1_ref, b1_ref,
                            ws2_ref, wn2_ref, b2_ref,
                            o_ref, *, n_dst1_p, n_dst2_p):
    """Fused 2-layer SAGEConv('mean'): per layer, one aggregation matmul plus two
    independent projection matmuls (self / neigh) summed in f32.  All operands are
    VMEM-resident, zero-padded to 128-aligned tiles."""
    bf16 = jnp.bfloat16
    f32 = jnp.float32

    x = x_ref[...]                                                     # (n_src1_p, fp) bf16

    # ---- layer 1: mean aggregation (A1 rows pre-normalized => A1 @ x is the mean) ----
    hn1 = jnp.dot(a1_ref[...], x, preferred_element_type=f32)          # (n_dst1_p, fp) f32
    h_self = jnp.dot(x[:n_dst1_p, :], ws1_ref[...], preferred_element_type=f32)
    h_neigh = jnp.dot(hn1.astype(bf16), wn1_ref[...], preferred_element_type=f32)
    h = jnp.maximum(h_self + h_neigh + b1_ref[...], 0.0)               # ReLU, f32
    h_bf = h.astype(bf16)                                              # (n_dst1_p, hp) bf16

    # ---- layer 2 (padded h rows beyond the real n_dst1 are zeroed by A2's zero cols) ----
    hn2 = jnp.dot(a2_ref[...], h_bf, preferred_element_type=f32)       # (n_dst2_p, hp) f32
    o_self = jnp.dot(h_bf[:n_dst2_p, :], ws2_ref[...], preferred_element_type=f32)
    o_neigh = jnp.dot(hn2.astype(bf16), wn2_ref[...], preferred_element_type=f32)
    o_ref[...] = (o_self + o_neigh + b2_ref[...]).astype(o_ref.dtype)  # lane-dense store


def _fused_sage_call(a1_p, a2_p, x_p, ws1, wn1, b1, ws2, wn2, b2):
    n_dst1_p, _ = a1_p.shape
    n_dst2_p, _ = a2_p.shape
    cp = ws2.shape[1]

    def full_spec(shape):
        return pl.BlockSpec(shape, lambda i: (0,) * len(shape))

    kernel = functools.partial(_fused_graphsage_kernel,
                               n_dst1_p=n_dst1_p, n_dst2_p=n_dst2_p)
    return pl.pallas_call(
        kernel,
        out_shape=jax.ShapeDtypeStruct((n_dst2_p, cp), jnp.float32),
        grid=(1,),
        in_specs=[full_spec(a1_p.shape), full_spec(a2_p.shape), full_spec(x_p.shape),
                  full_spec(ws1.shape), full_spec(wn1.shape), full_spec(b1.shape),
                  full_spec(ws2.shape), full_spec(wn2.shape), full_spec(b2.shape)],
        out_specs=pl.BlockSpec((n_dst2_p, cp), lambda i: (0, 0)),
        compiler_params=pltpu.CompilerParams(
            dimension_semantics=("arbitrary",),
            vmem_limit_bytes=32 * 1024 * 1024),
    )(a1_p, a2_p, x_p, ws1, wn1, b1, ws2, wn2, b2)


def pack_params(params, in_feats, h_feats, num_classes):
    """Pad feature dims to 128 lanes; keep W_self / W_neigh separate.  Done once."""
    fp = _round_up(in_feats, LANE)
    hp = _round_up(h_feats, LANE)
    cp = _round_up(num_classes, LANE)
    bf16 = jnp.bfloat16
    return {
        "ws1": _pad2(params["w_self1"], fp, hp).astype(bf16),
        "wn1": _pad2(params["w_neigh1"], fp, hp).astype(bf16),
        "b1":  _pad2(params["b1"].reshape(1, -1), 1, hp).astype(jnp.float32),
        "ws2": _pad2(params["w_self2"], hp, cp).astype(bf16),
        "wn2": _pad2(params["w_neigh2"], hp, cp).astype(bf16),
        "b2":  _pad2(params["b2"].reshape(1, -1), 1, cp).astype(jnp.float32),
    }


def pack_graph(a1, a2):
    """Row-normalize, pad src/dst node axes to 128, cast to bf16.  Static per MFG -> once."""
    n_dst1, n_src1 = a1.shape
    n_dst2, _ = a2.shape
    n_src1_p = _round_up(n_src1, LANE)
    n_dst1_p = _round_up(n_dst1, LANE)
    n_dst2_p = _round_up(n_dst2, LANE)
    a1_p = _pad2(_row_normalize(a1), n_dst1_p, n_src1_p).astype(jnp.bfloat16)
    a2_p = _pad2(_row_normalize(a2), n_dst2_p, n_dst1_p).astype(jnp.bfloat16)
    return a1_p, a2_p


def pack_features(x, n_src1_p, in_feats):
    """Pad node features to 128-aligned rows/lanes and cast to bf16 (once per batch)."""
    fp = _round_up(in_feats, LANE)
    return _pad2(x, n_src1_p, fp).astype(jnp.bfloat16)


@functools.partial(jax.jit, static_argnames=("n_dst2", "num_classes"))
def graphsage_forward(a1_p, a2_p, x_p, packed, *, n_dst2, num_classes):
    """Model.forward: fused 2-layer SAGEConv; only the pallas_call + one unpad slice."""
    out_padded = _fused_sage_call(a1_p, a2_p, x_p,
                                  packed["ws1"], packed["wn1"], packed["b1"],
                                  packed["ws2"], packed["wn2"], packed["b2"])
    return out_padded[:n_dst2, :num_classes]


if __name__ == "__main__":
    # Small synthetic MFG-style problem:
    #   block 1: 64 src nodes -> 32 dst nodes ; block 2: 32 src nodes -> 16 dst nodes
    in_feats, h_feats, num_classes = 16, 32, 8
    n_src1, n_dst1, n_dst2 = 64, 32, 16

    key = jax.random.PRNGKey(0)
    k_x, k_a1, k_a2, k_w1s, k_w1n, k_w2s, k_w2n = jax.random.split(key, 7)

    # node features for all src nodes of block 1 (dst nodes are the first n_dst1 of them)
    x = jax.random.normal(k_x, (n_src1, in_feats), dtype=jnp.float32)

    # random bipartite adjacencies; guarantee >=1 neighbor per dst via a "self" edge
    a1 = (jax.random.uniform(k_a1, (n_dst1, n_src1)) < 0.15).astype(jnp.float32)
    a1 = jnp.maximum(a1, jnp.eye(n_dst1, n_src1, dtype=jnp.float32))
    a2 = (jax.random.uniform(k_a2, (n_dst2, n_dst1)) < 0.25).astype(jnp.float32)
    a2 = jnp.maximum(a2, jnp.eye(n_dst2, n_dst1, dtype=jnp.float32))

    # deterministic SAGEConv parameters (fc_self / fc_neigh / bias per layer)
    params = {
        "w_self1":  0.1 * jax.random.normal(k_w1s, (in_feats, h_feats), dtype=jnp.float32),
        "w_neigh1": 0.1 * jax.random.normal(k_w1n, (in_feats, h_feats), dtype=jnp.float32),
        "b1":       jnp.zeros((h_feats,), dtype=jnp.float32),
        "w_self2":  0.1 * jax.random.normal(k_w2s, (h_feats, num_classes), dtype=jnp.float32),
        "w_neigh2": 0.1 * jax.random.normal(k_w2n, (h_feats, num_classes), dtype=jnp.float32),
        "b2":       jnp.zeros((num_classes,), dtype=jnp.float32),
    }

    # ---- one-time prep (hoisted out of the per-call forward) ----
    packed = pack_params(params, in_feats, h_feats, num_classes)
    a1_p, a2_p = pack_graph(a1, a2)
    x_p = pack_features(x, a1_p.shape[1], in_feats)

    out = graphsage_forward(a1_p, a2_p, x_p, packed,
                            n_dst2=n_dst2, num_classes=num_classes)
    out = jax.block_until_ready(out)
    assert out.shape == (n_dst2, num_classes), out.shape

    # pure-JAX reference mirroring the kernel's bf16-input / f32-accumulate math
    def ref():
        bf = jnp.bfloat16
        a1n = _row_normalize(a1).astype(bf)
        a2n = _row_normalize(a2).astype(bf)
        xb = x.astype(bf)
        ws1, wn1 = params["w_self1"].astype(bf), params["w_neigh1"].astype(bf)
        ws2, wn2 = params["w_self2"].astype(bf), params["w_neigh2"].astype(bf)
        hn1 = jnp.dot(a1n, xb, preferred_element_type=jnp.float32).astype(bf)
        h = (jnp.dot(xb[:n_dst1], ws1, preferred_element_type=jnp.float32)
             + jnp.dot(hn1, wn1, preferred_element_type=jnp.float32)
             + params["b1"])
        h = jnp.maximum(h, 0.0).astype(bf)
        hn2 = jnp.dot(a2n, h, preferred_element_type=jnp.float32).astype(bf)
        return (jnp.dot(h[:n_dst2], ws2, preferred_element_type=jnp.float32)
                + jnp.dot(hn2, wn2, preferred_element_type=jnp.float32)
                + params["b2"])

    assert jnp.allclose(out, ref(), atol=2e-2, rtol=2e-2)
    print("KERNEL_OK")
</pallas_src>

<mosaic_0001>
module attributes {stable_mosaic.version = 11 : i64} {
  func.func @_fused_graphsage_kernel(%arg0: i32, %arg1: memref<128x128xbf16, #tpu.memory_space<vmem>>, %arg2: memref<128x128xbf16, #tpu.memory_space<vmem>>, %arg3: memref<128x128xbf16, #tpu.memory_space<vmem>>, %arg4: memref<128x128xbf16, #tpu.memory_space<vmem>>, %arg5: memref<128x128xbf16, #tpu.memory_space<vmem>>, %arg6: memref<1x128xf32, #tpu.memory_space<vmem>>, %arg7: memref<128x128xbf16, #tpu.memory_space<vmem>>, %arg8: memref<128x128xbf16, #tpu.memory_space<vmem>>, %arg9: memref<1x128xf32, #tpu.memory_space<vmem>>, %arg10: memref<128x128xf32, #tpu.memory_space<vmem>>) attributes {dimension_semantics = [#tpu.dimension_semantics<arbitrary>], iteration_bounds = array<i64: 1>, scalar_prefetch = 0 : i64, scratch_operands = 0 : i64, tpu.core_type = #tpu.core_type<tc>, window_params = [{pipeline_mode = #tpu.pipeline_mode<synchronous>, transform_indices = @transform_0, window_bounds = array<i64: 128, 128>}, {pipeline_mode = #tpu.pipeline_mode<synchronous>, transform_indices = @transform_1, window_bounds = array<i64: 128, 128>}, {pipeline_mode = #tpu.pipeline_mode<synchronous>, transform_indices = @transform_2, window_bounds = array<i64: 128, 128>}, {pipeline_mode = #tpu.pipeline_mode<synchronous>, transform_indices = @transform_3, window_bounds = array<i64: 128, 128>}, {pipeline_mode = #tpu.pipeline_mode<synchronous>, transform_indices = @transform_4, window_bounds = array<i64: 128, 128>}, {pipeline_mode = #tpu.pipeline_mode<synchronous>, transform_indices = @transform_5, window_bounds = array<i64: 1, 128>}, {pipeline_mode = #tpu.pipeline_mode<synchronous>, transform_indices = @transform_6, window_bounds = array<i64: 128, 128>}, {pipeline_mode = #tpu.pipeline_mode<synchronous>, transform_indices = @transform_7, window_bounds = array<i64: 128, 128>}, {pipeline_mode = #tpu.pipeline_mode<synchronous>, transform_indices = @transform_8, window_bounds = array<i64: 1, 128>}, {pipeline_mode = #tpu.pipeline_mode<synchronous>, transform_indices = @transform_9, window_bounds = array<i64: 128, 128>}]} {
    %c0 = arith.constant 0 : index
    %c0_0 = arith.constant 0 : index
    %0 = vector.load %arg3[%c0, %c0_0] : memref<128x128xbf16, #tpu.memory_space<vmem>>, vector<128x128xbf16>
    %c0_1 = arith.constant 0 : index
    %c0_2 = arith.constant 0 : index
    %1 = vector.load %arg1[%c0_1, %c0_2] : memref<128x128xbf16, #tpu.memory_space<vmem>>, vector<128x128xbf16>
    %cst = arith.constant dense<0.000000e+00> : vector<128x128xf32>
    %2 = tpu.matmul %1, %0, %cst {dimension_numbers = #tpu.dot_dimension_numbers<[1], [0], [0], [1], [0, 0, 1, 1], [], []>} : vector<128x128xbf16>, vector<128x128xbf16>, vector<128x128xf32> -> vector<128x128xf32>
    %c0_3 = arith.constant 0 : index
    %c0_4 = arith.constant 0 : index
    %3 = vector.load %arg4[%c0_3, %c0_4] : memref<128x128xbf16, #tpu.memory_space<vmem>>, vector<128x128xbf16>
    %cst_5 = arith.constant dense<0.000000e+00> : vector<128x128xf32>
    %4 = tpu.matmul %0, %3, %cst_5 {dimension_numbers = #tpu.dot_dimension_numbers<[1], [0], [0], [1], [0, 0, 1, 1], [], []>} : vector<128x128xbf16>, vector<128x128xbf16>, vector<128x128xf32> -> vector<128x128xf32>
    %5 = arith.truncf %2 : vector<128x128xf32> to vector<128x128xbf16>
    %c0_6 = arith.constant 0 : index
    %c0_7 = arith.constant 0 : index
    %6 = vector.load %arg5[%c0_6, %c0_7] : memref<128x128xbf16, #tpu.memory_space<vmem>>, vector<128x128xbf16>
    %cst_8 = arith.constant dense<0.000000e+00> : vector<128x128xf32>
    %7 = tpu.matmul %5, %6, %cst_8 {dimension_numbers = #tpu.dot_dimension_numbers<[1], [0], [0], [1], [0, 0, 1, 1], [], []>} : vector<128x128xbf16>, vector<128x128xbf16>, vector<128x128xf32> -> vector<128x128xf32>
    %8 = arith.addf %4, %7 : vector<128x128xf32>
    %c0_9 = arith.constant 0 : index
    %c0_10 = arith.constant 0 : index
    %9 = vector.load %arg6[%c0_9, %c0_10] : memref<1x128xf32, #tpu.memory_space<vmem>>, vector<1x128xf32>
    %10 = vector.broadcast %9 : vector<1x128xf32> to vector<128x128xf32>
    %11 = arith.addf %8, %10 : vector<128x128xf32>
    %cst_11 = arith.constant 0.000000e+00 : f32
    %12 = vector.broadcast %cst_11 : f32 to vector<128x128xf32>
    %13 = arith.maximumf %11, %12 : vector<128x128xf32>
    %14 = arith.truncf %13 : vector<128x128xf32> to vector<128x128xbf16>
    %c0_12 = arith.constant 0 : index
    %c0_13 = arith.constant 0 : index
    %15 = vector.load %arg2[%c0_12, %c0_13] : memref<128x128xbf16, #tpu.memory_space<vmem>>, vector<128x128xbf16>
    %cst_14 = arith.constant dense<0.000000e+00> : vector<128x128xf32>
    %16 = tpu.matmul %15, %14, %cst_14 {dimension_numbers = #tpu.dot_dimension_numbers<[1], [0], [0], [1], [0, 0, 1, 1], [], []>} : vector<128x128xbf16>, vector<128x128xbf16>, vector<128x128xf32> -> vector<128x128xf32>
    %c0_15 = arith.constant 0 : index
    %c0_16 = arith.constant 0 : index
    %17 = vector.load %arg7[%c0_15, %c0_16] : memref<128x128xbf16, #tpu.memory_space<vmem>>, vector<128x128xbf16>
    %cst_17 = arith.constant dense<0.000000e+00> : vector<128x128xf32>
    %18 = tpu.matmul %14, %17, %cst_17 {dimension_numbers = #tpu.dot_dimension_numbers<[1], [0], [0], [1], [0, 0, 1, 1], [], []>} : vector<128x128xbf16>, vector<128x128xbf16>, vector<128x128xf32> -> vector<128x128xf32>
    %19 = arith.truncf %16 : vector<128x128xf32> to vector<128x128xbf16>
    %c0_18 = arith.constant 0 : index
    %c0_19 = arith.constant 0 : index
    %20 = vector.load %arg8[%c0_18, %c0_19] : memref<128x128xbf16, #tpu.memory_space<vmem>>, vector<128x128xbf16>
    %cst_20 = arith.constant dense<0.000000e+00> : vector<128x128xf32>
    %21 = tpu.matmul %19, %20, %cst_20 {dimension_numbers = #tpu.dot_dimension_numbers<[1], [0], [0], [1], [0, 0, 1, 1], [], []>} : vector<128x128xbf16>, vector<128x128xbf16>, vector<128x128xf32> -> vector<128x128xf32>
    %22 = arith.addf %18, %21 : vector<128x128xf32>
    %c0_21 = arith.constant 0 : index
    %c0_22 = arith.constant 0 : index
    %23 = vector.load %arg9[%c0_21, %c0_22] : memref<1x128xf32, #tpu.memory_space<vmem>>, vector<1x128xf32>
    %24 = vector.broadcast %23 : vector<1x128xf32> to vector<128x128xf32>
    %25 = arith.addf %22, %24 : vector<128x128xf32>
    %c0_23 = arith.constant 0 : index
    %c0_24 = arith.constant 0 : index
    %26 = vector.load %arg10[%c0_23, %c0_24] : memref<128x128xf32, #tpu.memory_space<vmem>>, vector<128x128xf32>
    tpu.vector_store %arg10[%c0_23, %c0_24], %25 {strides = array<i32>} : memref<128x128xf32, #tpu.memory_space<vmem>>, vector<128x128xf32>,
    return
  }
  func.func @transform_0(%arg0: i32) -> (i32, i32) {
    %c0_i32 = arith.constant 0 : i32
    %c0_i32_0 = arith.constant 0 : i32
    %c0_i32_1 = arith.constant 0 : i32
    return %c0_i32, %c0_i32_0 : i32, i32
  }
  func.func @transform_1(%arg0: i32) -> (i32, i32) {
    %c0_i32 = arith.constant 0 : i32
    %c0_i32_0 = arith.constant 0 : i32
    %c0_i32_1 = arith.constant 0 : i32
    return %c0_i32, %c0_i32_0 : i32, i32
  }
  func.func @transform_2(%arg0: i32) -> (i32, i32) {
    %c0_i32 = arith.constant 0 : i32
    %c0_i32_0 = arith.constant 0 : i32
    %c0_i32_1 = arith.constant 0 : i32
    return %c0_i32, %c0_i32_0 : i32, i32
  }
  func.func @transform_3(%arg0: i32) -> (i32, i32) {
    %c0_i32 = arith.constant 0 : i32
    %c0_i32_0 = arith.constant 0 : i32
    %c0_i32_1 = arith.constant 0 : i32
    return %c0_i32, %c0_i32_0 : i32, i32
  }
  func.func @transform_4(%arg0: i32) -> (i32, i32) {
    %c0_i32 = arith.constant 0 : i32
    %c0_i32_0 = arith.constant 0 : i32
    %c0_i32_1 = arith.constant 0 : i32
    return %c0_i32, %c0_i32_0 : i32, i32
  }
  func.func @transform_5(%arg0: i32) -> (i32, i32) {
    %c0_i32 = arith.constant 0 : i32
    %c0_i32_0 = arith.constant 0 : i32
    %c0_i32_1 = arith.constant 0 : i32
    return %c0_i32, %c0_i32_0 : i32, i32
  }
  func.func @transform_6(%arg0: i32) -> (i32, i32) {
    %c0_i32 = arith.constant 0 : i32
    %c0_i32_0 = arith.constant 0 : i32
    %c0_i32_1 = arith.constant 0 : i32
    return %c0_i32, %c0_i32_0 : i32, i32
  }
  func.func @transform_7(%arg0: i32) -> (i32, i32) {
    %c0_i32 = arith.constant 0 : i32
    %c0_i32_0 = arith.constant 0 : i32
    %c0_i32_1 = arith.constant 0 : i32
    return %c0_i32, %c0_i32_0 : i32, i32
  }
  func.func @transform_8(%arg0: i32) -> (i32, i32) {
    %c0_i32 = arith.constant 0 : i32
    %c0_i32_0 = arith.constant 0 : i32
    %c0_i32_1 = arith.constant 0 : i32
    return %c0_i32, %c0_i32_0 : i32, i32
  }
  func.func @transform_9(%arg0: i32) -> (i32, i32) {
    %c0_i32 = arith.constant 0 : i32
    %c0_i32_0 = arith.constant 0 : i32
    %c0_i32_1 = arith.constant 0 : i32
    return %c0_i32, %c0_i32_0 : i32, i32
  }
}

</mosaic_0001>

<bundles_post_ra>
// kernel: graphsage_forward.1
= control target key start
LH: loop header
LB: loop body
LE: loop exit
PB: predicated region body
PF: predicated region fallthrough
CT: control target
= control target key end

     0   :  { %14 = vsyncpa [#allocation3], 0  ;;  %s1694_s0 = inlined_call_operand.hbm [shape: bf16[128,128], index: 0, kind: input, shape index: {}]   ;;  %s1695_s1 = inlined_call_operand.hbm [shape: bf16[128,128], index: 1, kind: input, shape index: {}]   ;;  %s1696_s2 = inlined_call_operand.hbm [shape: bf16[128,128], index: 2, kind: input, shape index: {}]   ;;  %s1697_s3 = inlined_call_operand.hbm [shape: bf16[128,128], index: 3, kind: input, shape index: {}]   ;;  %s1698_s4 = inlined_call_operand.hbm [shape: bf16[128,128], index: 4, kind: input, shape index: {}]   ;;  %s1699_s5 = inlined_call_operand.vmem [shape: f32[1,128], index: 5, kind: input, shape index: {}]   ;;  %s1700_s6 = inlined_call_operand.hbm [shape: bf16[128,128], index: 6, kind: input, shape index: {}]   ;;  %s1701_s7 = inlined_call_operand.hbm [shape: bf16[128,128], index: 7, kind: input, shape index: {}]   ;;  %s1702_s8 = inlined_call_operand.vmem [shape: f32[1,128], index: 8, kind: input, shape index: {}]   ;;  %s1703_s9 = inlined_call_operand.vmem [shape: f32[128,128], index: 9, kind: output, shape index: {}]  }
   0x1   :  { %15 = vsyncpa [#allocation5], 0 }
   0x2   :  { %16 = vsyncpa [#allocation8], 0 }
   0x3   :  { %17 = vsyncpa [#allocation11], 0  ;;  %s35_s11 = sshll.u32 %s1695_s1, 4  ;;  %s1470_s12 = smov [#allocation4]   ;;  %s36_s11 = int_to_ptr.hbm [resolvable:$true] %s35_s11 }
   0x4   :  { %s37_s13 = sshll.u32 %s1470_s12, 4  ;;  %s61_s16 = sshll.u32 %s1697_s3, 4  ;;  %s38_s13 = int_to_ptr.vmem [resolvable:$true] %s37_s13  ;;  %s62_s16 = int_to_ptr.hbm [resolvable:$true] %s61_s16 }
   0x5   :  { %s1471_s17 = smov 64   ;;  %s1472_s18 = smov 4  }
   0x6   :  { %43 = dma.hbm_to_vmem [thread:$0]  %s36_s11, 1024, %s38_s13, [#allocation5], %s1471_s17, %s1471_s17, %s1472_s18  }
   0x7   :  { %s1473_s19 = smov [#allocation7]   ;;  %s89_s1 = sshll.u32 %s1700_s6, 4  ;;  %s90_s1 = int_to_ptr.hbm [resolvable:$true] %s89_s1 }
   0x8   :  { %s63_s20 = sshll.u32 %s1473_s19, 4  ;;  %s22_s24 = sshll.u32 %s1694_s0, 4  ;;  %s64_s20 = int_to_ptr.vmem [resolvable:$true] %s63_s20  ;;  %s23_s24 = int_to_ptr.hbm [resolvable:$true] %s22_s24 }
   0x9   :  { %69 = dma.hbm_to_vmem [thread:$0]  %s62_s16, 1024, %s64_s20, [#allocation8], %s1471_s17, %s1471_s17, %s1472_s18  }
   0xa   :  { %s1474_s25 = smov [#allocation10]   ;;  %s1475_s27 = smov [#allocation2]  }
   0xb   :  { %s91_s26 = sshll.u32 %s1474_s25, 4  ;;  %s24_s6 = sshll.u32 %s1475_s27, 4  ;;  %s92_s26 = int_to_ptr.vmem [resolvable:$true] %s91_s26  ;;  %s25_s6 = int_to_ptr.vmem [resolvable:$true] %s24_s6 }
   0xc   :  { %97 = dma.hbm_to_vmem [thread:$0]  %s90_s1, 1024, %s92_s26, [#allocation11], %s1471_s17, %s1471_s17, %s1472_s18  }
   0xd   :  { %s48_s30 = sshll.u32 %s1696_s2, 4  ;;  %s74_s11 = sshll.u32 %s1698_s4, 4  ;;  %s49_s30 = int_to_ptr.hbm [resolvable:$true] %s48_s30  ;;  %s75_s11 = int_to_ptr.hbm [resolvable:$true] %s74_s11 }
   0xe   :  { %30 = dma.hbm_to_vmem [thread:$0]  %s23_s24, 1024, %s25_s6, [#allocation3], %s1471_s17, %s1471_s17, %s1472_s18  }
   0xf   :  { %s1476_s12 = smov [#allocation6]   ;;  %s1477_s14 = smov [#allocation9]  }
  0x10   :  { %s50_s13 = sshll.u32 %s1476_s12, 4  ;;  %s76_s2 = sshll.u32 %s1477_s14, 4  ;;  %s51_s13 = int_to_ptr.vmem [resolvable:$true] %s50_s13  ;;  %s77_s2 = int_to_ptr.vmem [resolvable:$true] %s76_s2 }
  0x11   :  { %56 = dma.hbm_to_vmem [thread:$0]  %s49_s30, 1024, %s51_s13, [#allocation5], %s1471_s17, %s1471_s17, %s1472_s18  }
  0x12   :  { %s102_s19 = sshll.u32 %s1701_s7, 4  ;;  %s1478_s4 = smov [#allocation12]   ;;  %s103_s19 = int_to_ptr.hbm [resolvable:$true] %s102_s19 }
  0x13   :  { %82 = dma.hbm_to_vmem [thread:$0]  %s75_s11, 1024, %s77_s2, [#allocation8], %s1471_s17, %s1471_s17, %s1472_s18  }
  0x14   :  { %s104_s20 = sshll.u32 %s1478_s4, 4  ;;  %s105_s20 = int_to_ptr.vmem [resolvable:$true] %s104_s20 }
  0x15   :  { %110 = dma.hbm_to_vmem [thread:$0]  %s103_s19, 1024, %s105_s20, [#allocation11], %s1471_s17, %s1471_s17, %s1472_s18  }
  0x16   :  { %1462 = dma.done.wait [#allocation3], 1024  }
  0x17   :  { %1463 = vsyncadd [#allocation3], 4294966272 }
  0x18   :  { %1464 = dma.done.wait [#allocation5], 2048  }
  0x19   :  { %1465 = vsyncadd [#allocation5], 4294965248 }
  0x1a   :  { %1466 = dma.done.wait [#allocation8], 2048  }
  0x1b   :  { %1467 = vsyncadd [#allocation8], 4294965248 }
  0x1c   :  { %1468 = dma.done.wait [#allocation11], 2048  }
  0x1d   :  { %1469 = vsyncadd [#allocation11], 4294965248  ;;  %v1571_v0 = vld [vmem:[#allocation6 + $0x38] sm:$0xff]  ;;  %v1575_v1 = vld [vmem:[#allocation6 + $0x30] sm:$0xff] }
  0x1e   :  { %269 = vmatpush.bf16.msra.mxu0 %v1571_v0  ;;  %1267 = vmatpush.bf16.msra.mxu2 %v1571_v0  ;;  %v1579_v2 = vld [vmem:[#allocation6 + $0x28] sm:$0xff]  ;;  %v1583_v3 = vld [vmem:[#allocation6 + $0x20] sm:$0xff]  ;;  %v1587_v4 = vld [vmem:[#allocation6 + $0x18] sm:$0xff] }
  0x1f   :  { %v1213_v5 = vld [vmem:[#allocation6 + $0x10] sm:$0xff]  ;;  %v1212_v6 = vld [vmem:[#allocation6 + $0x8] sm:$0xff]  ;;  %v1211_v7 = vld [vmem:[#allocation6] sm:$0xff] }
  0x20   :  { %v1219_v8 = vld [vmem:[#allocation2] sm:$0xff]  ;;  %v1234_v10 = vld [vmem:[#allocation7 + $0x38] sm:$0xff]  ;;  %v1233_v11 = vld [vmem:[#allocation7 + $0x30] sm:$0xff] }
  0x21   :  { %v1223_v9 = vld [vmem:[#allocation2 + $0x20] sm:$0xff]  ;;  %v1232_v12 = vld [vmem:[#allocation7 + $0x28] sm:$0xff]  ;;  %v1230_v16 = vld [vmem:[#allocation7 + $0x18] sm:$0xff] }
  0x22   :  { %270 = vmatpush.bf16.msra.mxu0 %v1575_v1  ;;  %1268 = vmatpush.bf16.msra.mxu2 %v1575_v1  ;;  %v1220_v13 = vld [vmem:[#allocation2 + $0x8] sm:$0xff]  ;;  %v1231_v15 = vld [vmem:[#allocation7 + $0x20] sm:$0xff]  ;;  %v1229_v17 = vld [vmem:[#allocation7 + $0x10] sm:$0xff] }
  0x23   :  { %v1224_v14 = vld [vmem:[#allocation2 + $0x28] sm:$0xff]  ;;  %v1221_v19 = vld [vmem:[#allocation2 + $0x10] sm:$0xff]  ;;  %v1227_v21 = vld [vmem:[#allocation7] sm:$0xff] }
  0x24   :  { %v1228_v18 = vld [vmem:[#allocation7 + $0x8] sm:$0xff]  ;;  %v1225_v20 = vld [vmem:[#allocation2 + $0x30] sm:$0xff]  ;;  %v1222_v22 = vld [vmem:[#allocation2 + $0x18] sm:$0xff] }
  0x25   :  { %v1226_v23 = vld [vmem:[#allocation2 + $0x38] sm:$0xff]  ;;  %v1241_v25 = vld [vmem:[#allocation9 + $0x30] sm:$0xff]  ;;  %v1240_v26 = vld [vmem:[#allocation9 + $0x28] sm:$0xff] }
  0x26   :  { %271 = vmatpush.bf16.msra.mxu0 %v1579_v2  ;;  %1269 = vmatpush.bf16.msra.mxu2 %v1579_v2  ;;  %v1242_v24 = vld [vmem:[#allocation9 + $0x38] sm:$0xff]  ;;  %v1239_v27 = vld [vmem:[#allocation9 + $0x20] sm:$0xff]  ;;  %v1237_v29 = vld [vmem:[#allocation9 + $0x10] sm:$0xff] }
  0x27   :  { %406 = vmatpush.bf16.msra.mxu1 %v1242_v24  ;;  %1275 = vmatpush.bf16.msra.mxu3 %v1242_v24  ;;  %v1238_v28 = vld [vmem:[#allocation9 + $0x18] sm:$0xff]  ;;  %v1236_v30 = vld [vmem:[#allocation9 + $0x8] sm:$0xff]  ;;  %v1235_v31 = vld [vmem:[#allocation9] sm:$0xff] }
  0x28   :  { %v1258_v58 = vld [vmem:[#allocation10 + $0x38] sm:$0xff]  ;;  %v1257_v60 = vld [vmem:[#allocation10 + $0x30] sm:$0xff]  ;;  %v1256_v61 = vld [vmem:[#allocation10 + $0x28] sm:$0xff] }
  0x29   :  { %v1255_v63 = vld [vmem:[#allocation10 + $0x20] sm:$0xff] }
  0x2a   :  { %272 = vmatpush.bf16.msra.mxu0 %v1583_v3  ;;  %1270 = vmatpush.bf16.msra.mxu2 %v1583_v3 }
  0x2b   :  { %407 = vmatpush.bf16.msra.mxu1 %v1241_v25  ;;  %1276 = vmatpush.bf16.msra.mxu3 %v1241_v25 }
  0x2e   :  { %273 = vmatpush.bf16.msra.mxu0 %v1587_v4  ;;  %1271 = vmatpush.bf16.msra.mxu2 %v1587_v4 }
  0x2f   :  { %408 = vmatpush.bf16.msra.mxu1 %v1240_v26  ;;  %1277 = vmatpush.bf16.msra.mxu3 %v1240_v26 }
  0x32   :  { %274 = vmatpush.bf16.msra.mxu0 %v1213_v5  ;;  %1272 = vmatpush.bf16.msra.mxu2 %v1213_v5 }
  0x33   :  { %409 = vmatpush.bf16.msra.mxu1 %v1239_v27  ;;  %1278 = vmatpush.bf16.msra.mxu3 %v1239_v27 }
  0x36   :  { %275 = vmatpush.bf16.msra.mxu0 %v1212_v6  ;;  %1273 = vmatpush.bf16.msra.mxu2 %v1212_v6 }
  0x37   :  { %410 = vmatpush.bf16.msra.mxu1 %v1238_v28  ;;  %1279 = vmatpush.bf16.msra.mxu3 %v1238_v28 }
  0x3a   :  { %276 = vmatpush.bf16.msra.mxu0 %v1211_v7  ;;  %1274 = vmatpush.bf16.msra.mxu2 %v1211_v7 }
  0x3b   :  { %411 = vmatpush.bf16.msra.mxu1 %v1237_v29  ;;  %1280 = vmatpush.bf16.msra.mxu3 %v1237_v29 }
  0x3d   :  { %277 = vmatmul.bf16.vlgmr.msra.gmra.mxu0 %v1219_v8  ;;  %297 = vmatmul.bf16.vlgmr.msra.gmra.mxu2 %v1223_v9 }
  0x3e   :  { %503 = vmatpush.bf16.msrb.mxu2 %v1234_v10 }
  0x3f   :  { %412 = vmatpush.bf16.msra.mxu1 %v1236_v30  ;;  %1281 = vmatpush.bf16.msra.mxu3 %v1236_v30 }
  0x42   :  { %504 = vmatpush.bf16.msrb.mxu2 %v1233_v11  ;;  %v1599_v11 = vld [vmem:[%s1699_s5] ss:$0 sm:$0xff] }
  0x43   :  { %413 = vmatpush.bf16.msra.mxu1 %v1235_v31  ;;  %1282 = vmatpush.bf16.msra.mxu3 %v1235_v31 }
  0x46   :  { %505 = vmatpush.bf16.msrb.mxu2 %v1232_v12 }
  0x47   :  { %894 = vmatpush.bf16.msrb.mxu1 %v1258_v58 }
  0x4a   :  { %506 = vmatpush.bf16.msrb.mxu2 %v1231_v15 }
  0x4b   :  { %895 = vmatpush.bf16.msrb.mxu1 %v1257_v60 }
  0x4d   :  { %282 = vmatmul.bf16.gmra.mxu0 %v1220_v13  ;;  %302 = vmatmul.bf16.gmra.mxu2 %v1224_v14 }
  0x4e   :  { %507 = vmatpush.bf16.msrb.mxu2 %v1230_v16 }
  0x4f   :  { %896 = vmatpush.bf16.msrb.mxu1 %v1256_v61 }
  0x52   :  { %508 = vmatpush.bf16.msrb.mxu2 %v1229_v17 }
  0x53   :  { %897 = vmatpush.bf16.msrb.mxu1 %v1255_v63 }
  0x56   :  { %509 = vmatpush.bf16.msrb.mxu2 %v1228_v18 }
  0x5a   :  { %510 = vmatpush.bf16.msrb.mxu2 %v1227_v21 }
  0x5d   :  { %287 = vmatmul.bf16.gmra.mxu0 %v1221_v19  ;;  %307 = vmatmul.bf16.gmra.mxu2 %v1225_v20 }
  0x6d   :  { %292 = vmatmul.bf16.gmra.mxu0 %v1222_v22  ;;  %312 = vmatmul.bf16.gmra.mxu2 %v1226_v23 }
  0x7d   :  { %511 = vmatmul.bf16.vlgmr.msrb.gmra.mxu2 %v1211_v7 }
  0x8d   :  { %516 = vmatmul.bf16.gmra.mxu2 %v1212_v6 }
  0x9d   :  { %521 = vmatmul.bf16.gmra.mxu2 %v1213_v5  ;;  %v1251_v5 = vld [vmem:[#allocation10] sm:$0xff] }
  0xad   :  { %526 = vmatmul.bf16.gmra.mxu2 %v1587_v4  ;;  %v1252_v4 = vld [vmem:[#allocation10 + $0x8] sm:$0xff] }
  0xba   :  { %v278_v32 = vpop.f32.mrf.mxu0 }
  0xbd   :  { %531 = vmatmul.bf16.gmra.mxu2 %v1583_v3 }
  0xc0   :  { %v298_v33 = vpop.f32.mrf.mxu2 }
  0xc2   :  { %v280_v34 = vpop.f32.mrf.mxu0 }
  0xc3   :  { %v334_v35 = vpack.c.bf16 %v280_v34, %v278_v32 }
  0xc5   :  { %414 = vmatmul.bf16.vlgmr.msra.gmra.mxu1 %v334_v35 }
  0xc8   :  { %v300_v36 = vpop.f32.mrf.mxu2 }
  0xc9   :  { %v338_v37 = vpack.c.bf16 %v300_v36, %v298_v33 }
  0xca   :  { %v283_v38 = vpop.f32.mrf.mxu0 }
  0xcb   :  { %434 = vmatmul.bf16.vlgmr.msra.gmra.mxu3 %v338_v37 }
  0xcd   :  { %536 = vmatmul.bf16.gmra.mxu2 %v1579_v2  ;;  %v1253_v2 = vld [vmem:[#allocation10 + $0x10] sm:$0xff] }
  0xd0   :  { %v303_v39 = vpop.f32.mrf.mxu2 }
  0xd2   :  { %v285_v40 = vpop.f32.mrf.mxu0 }
  0xd3   :  { %v335_v41 = vpack.c.bf16 %v285_v40, %v283_v38 }
  0xd5   :  { %419 = vmatmul.bf16.gmra.mxu1 %v335_v41 }
  0xd8   :  { %v305_v42 = vpop.f32.mrf.mxu2 }
  0xd9   :  { %v339_v43 = vpack.c.bf16 %v305_v42, %v303_v39 }
  0xda   :  { %v288_v44 = vpop.f32.mrf.mxu0 }
  0xdb   :  { %439 = vmatmul.bf16.gmra.mxu3 %v339_v43 }
  0xdd   :  { %541 = vmatmul.bf16.gmra.mxu2 %v1575_v1  ;;  %v1254_v1 = vld [vmem:[#allocation10 + $0x18] sm:$0xff] }
  0xde   :  { %898 = vmatpush.bf16.msrb.mxu1 %v1254_v1 }
  0xe0   :  { %v308_v45 = vpop.f32.mrf.mxu2 }
  0xe2   :  { %v290_v46 = vpop.f32.mrf.mxu0  ;;  %899 = vmatpush.bf16.msrb.mxu1 %v1253_v2 }
  0xe3   :  { %v336_v47 = vpack.c.bf16 %v290_v46, %v288_v44 }
  0xe5   :  { %424 = vmatmul.bf16.gmra.mxu1 %v336_v47 }
  0xe6   :  { %900 = vmatpush.bf16.msrb.mxu1 %v1252_v4 }
  0xe8   :  { %v310_v48 = vpop.f32.mrf.mxu2 }
  0xe9   :  { %v340_v49 = vpack.c.bf16 %v310_v48, %v308_v45 }
  0xea   :  { %v293_v50 = vpop.f32.mrf.mxu0  ;;  %901 = vmatpush.bf16.msrb.mxu1 %v1251_v5 }
  0xeb   :  { %444 = vmatmul.bf16.gmra.mxu3 %v340_v49 }
  0xed   :  { %546 = vmatmul.bf16.gmra.mxu2 %v1571_v0 }
  0xf0   :  { %v313_v51 = vpop.f32.mrf.mxu2 }
  0xf2   :  { %v295_v52 = vpop.f32.mrf.mxu0 }
  0xf3   :  { %v337_v53 = vpack.c.bf16 %v295_v52, %v293_v50 }
  0xf5   :  { %429 = vmatmul.bf16.gmra.mxu1 %v337_v53 }
  0xf8   :  { %v315_v54 = vpop.f32.mrf.mxu2 }
  0xf9   :  { %v341_v55 = vpack.c.bf16 %v315_v54, %v313_v51 }
  0xfb   :  { %449 = vmatmul.bf16.gmra.mxu3 %v341_v55 }
 0x100   :  { %v512_v56 = vpop.f32.mrf.mxu2 }
 0x108   :  { %v514_v57 = vpop.f32.mrf.mxu2 }
 0x110   :  { %v517_v59 = vpop.f32.mrf.mxu2 }
 0x118   :  { %v519_v62 = vpop.f32.mrf.mxu2 }
 0x120   :  { %v522_v0 = vpop.f32.mrf.mxu2 }
 0x128   :  { %v524_v3 = vpop.f32.mrf.mxu2 }
 0x130   :  { %v527_v6 = vpop.f32.mrf.mxu2 }
 0x138   :  { %v529_v7 = vpop.f32.mrf.mxu2 }
 0x140   :  { %v532_v8 = vpop.f32.mrf.mxu2 }
 0x142   :  { %v415_v9 = vpop.f32.mrf.mxu1 }
 0x143   :  { %v513_v10 = vadd.f32 %v512_v56, %v415_v9 }
 0x145   :  { %v556_v14 = vadd.f32 %v1599_v11, %v513_v10 }
 0x147   :  { %v572_v18 = vmax.f32 %v556_v14, 0.0 }
 0x148   :  { %v534_v13 = vpop.f32.mrf.mxu2 }
 0x14a   :  { %v417_v12 = vpop.f32.mrf.mxu1 }
 0x14b   :  { %v515_v15 = vadd.f32 %v514_v57, %v417_v12 }
 0x14d   :  { %v557_v16 = vadd.f32 %v1599_v11, %v515_v15 }
 0x14e   :  { %v435_v17 = vpop.f32.mrf.mxu3 }
 0x14f   :  { %v573_v19 = vmax.f32 %v557_v16, 0.0 }
 0x150   :  { %v537_v22 = vpop.f32.mrf.mxu2 }
 0x151   :  { %v1603_v20 = vpack.c.bf16 %v573_v19, %v572_v18 }
 0x152   :  { %v420_v21 = vpop.f32.mrf.mxu1 }
 0x153   :  { %902 = vmatmul.bf16.vlgmr.msrb.gmra.mxu1 %v1603_v20  ;;  %v518_v24 = vadd.f32 %v517_v59, %v420_v21 }
 0x155   :  { %v558_v26 = vadd.f32 %v1599_v11, %v518_v24 }
 0x156   :  { %v437_v23 = vpop.f32.mrf.mxu3 }
 0x157   :  { %v574_v31 = vmax.f32 %v558_v26, 0.0  ;;  %v535_v60 = vadd.f32 %v534_v13, %v437_v23 }
 0x158   :  { %v539_v30 = vpop.f32.mrf.mxu2 }
 0x159   :  { %v565_v4 = vadd.f32 %v1599_v11, %v535_v60 }
 0x15a   :  { %v422_v25 = vpop.f32.mrf.mxu1 }
 0x15b   :  { %v520_v27 = vadd.f32 %v519_v62, %v422_v25  ;;  %v533_v62 = vadd.f32 %v532_v8, %v435_v17  ;;  %v581_v14 = vmax.f32 %v565_v4, 0.0  ;;  %v1628_v4 = vld [vmem:[%s1702_s8] ss:$0 sm:$0xff] }
 0x15d   :  { %v559_v28 = vadd.f32 %v1599_v11, %v520_v27  ;;  %v564_v9 = vadd.f32 %v1599_v11, %v533_v62  ;;  %v1243_v27 = vld [vmem:[#allocation4] sm:$0xff] }
 0x15e   :  { %v440_v29 = vpop.f32.mrf.mxu3 }
 0x15f   :  { %v575_v32 = vmax.f32 %v559_v28, 0.0  ;;  %v538_v10 = vadd.f32 %v537_v22, %v440_v29  ;;  %v580_v18 = vmax.f32 %v564_v9, 0.0  ;;  %v1245_v28 = vld [vmem:[#allocation4 + $0x10] sm:$0xff]  ;;  %v1246_v29 = vld [vmem:[#allocation4 + $0x18] sm:$0xff] }
 0x160   :  { %v542_v37 = vpop.f32.mrf.mxu2 }
 0x161   :  { %v1608_v33 = vpack.c.bf16 %v575_v32, %v574_v31  ;;  %v566_v19 = vadd.f32 %v1599_v11, %v538_v10  ;;  %v592_v25 = vpack.c.bf16 %v581_v14, %v580_v18  ;;  %v1266_v31 = vld [vmem:[#allocation12 + $0x38] sm:$0xff]  ;;  %v1248_v32 = vld [vmem:[#allocation4 + $0x28] sm:$0xff] }
 0x162   :  { %v425_v34 = vpop.f32.mrf.mxu1  ;;  %797 = vmatpush.bf16.msrb.mxu0 %v1266_v31 }
 0x163   :  { %907 = vmatmul.bf16.gmra.mxu1 %v1608_v33  ;;  %v523_v36 = vadd.f32 %v522_v0, %v425_v34  ;;  %v582_v26 = vmax.f32 %v566_v19, 0.0  ;;  %v1265_v34 = vld [vmem:[#allocation12 + $0x30] sm:$0xff] }
 0x165   :  { %v560_v39 = vadd.f32 %v1599_v11, %v523_v36  ;;  %v1249_v36 = vld [vmem:[#allocation4 + $0x30] sm:$0xff] }
 0x166   :  { %v442_v35 = vpop.f32.mrf.mxu3  ;;  %798 = vmatpush.bf16.msrb.mxu0 %v1265_v34 }
 0x167   :  { %v576_v43 = vmax.f32 %v560_v39, 0.0  ;;  %v540_v5 = vadd.f32 %v539_v30, %v442_v35  ;;  %v1247_v30 = vld [vmem:[#allocation4 + $0x20] sm:$0xff]  ;;  %v1262_v35 = vld [vmem:[#allocation12 + $0x18] sm:$0xff] }
 0x168   :  { %v544_v46 = vpop.f32.mrf.mxu2  ;;  %v1259_v39 = vld [vmem:[#allocation12] sm:$0xff] }
 0x169   :  { %v567_v15 = vadd.f32 %v1599_v11, %v540_v5 }
 0x16a   :  { %v427_v38 = vpop.f32.mrf.mxu1 }
 0x16b   :  { %v525_v40 = vadd.f32 %v524_v3, %v427_v38  ;;  %v583_v23 = vmax.f32 %v567_v15, 0.0  ;;  %v1260_v38 = vld [vmem:[#allocation12 + $0x8] sm:$0xff] }
 0x16d   :  { %v561_v41 = vadd.f32 %v1599_v11, %v525_v40  ;;  %v593_v22 = vpack.c.bf16 %v583_v23, %v582_v26  ;;  %v1250_v40 = vld [vmem:[#allocation4 + $0x38] sm:$0xff] }
 0x16e   :  { %v445_v42 = vpop.f32.mrf.mxu3 }
 0x16f   :  { %v577_v44 = vmax.f32 %v561_v41, 0.0  ;;  %v543_v1 = vadd.f32 %v542_v37, %v445_v42  ;;  %v1261_v37 = vld [vmem:[#allocation12 + $0x10] sm:$0xff] }
 0x170   :  { %v547_v53 = vpop.f32.mrf.mxu2 }
 0x171   :  { %v590_v45 = vpack.c.bf16 %v577_v44, %v576_v43  ;;  %v568_v12 = vadd.f32 %v1599_v11, %v543_v1 }
 0x172   :  { %v430_v47 = vpop.f32.mrf.mxu1 }
 0x173   :  { %912 = vmatmul.bf16.gmra.mxu1 %v590_v45  ;;  %v528_v49 = vadd.f32 %v527_v6, %v430_v47  ;;  %v584_v21 = vmax.f32 %v568_v12, 0.0 }
 0x175   :  { %v562_v51 = vadd.f32 %v1599_v11, %v528_v49 }
 0x176   :  { %v447_v48 = vpop.f32.mrf.mxu3 }
 0x177   :  { %v578_v56 = vmax.f32 %v562_v51, 0.0  ;;  %v545_v61 = vadd.f32 %v544_v46, %v447_v48 }
 0x178   :  { %v549_v63 = vpop.f32.mrf.mxu2 }
 0x179   :  { %v569_v6 = vadd.f32 %v1599_v11, %v545_v61 }
 0x17a   :  { %v432_v50 = vpop.f32.mrf.mxu1 }
 0x17b   :  { %v530_v52 = vadd.f32 %v529_v7, %v432_v50  ;;  %v585_v16 = vmax.f32 %v569_v6, 0.0 }
 0x17d   :  { %v563_v54 = vadd.f32 %v1599_v11, %v530_v52  ;;  %v594_v24 = vpack.c.bf16 %v585_v16, %v584_v21 }
 0x17e   :  { %v450_v55 = vpop.f32.mrf.mxu3 }
 0x17f   :  { %v579_v57 = vmax.f32 %v563_v54, 0.0  ;;  %v548_v59 = vadd.f32 %v547_v53, %v450_v55 }
 0x181   :  { %v591_v58 = vpack.c.bf16 %v579_v57, %v578_v56  ;;  %v570_v2 = vadd.f32 %v1599_v11, %v548_v59 }
 0x183   :  { %917 = vmatmul.bf16.gmra.mxu1 %v591_v58  ;;  %v586_v13 = vmax.f32 %v570_v2, 0.0 }
 0x186   :  { %v452_v0 = vpop.f32.mrf.mxu3 }
 0x187   :  { %v550_v3 = vadd.f32 %v549_v63, %v452_v0 }
 0x189   :  { %v571_v7 = vadd.f32 %v1599_v11, %v550_v3  ;;  %v1244_v11 = vld [vmem:[#allocation4 + $0x8] sm:$0xff] }
 0x18b   :  { %v587_v8 = vmax.f32 %v571_v7, 0.0 }
 0x18d   :  { %v595_v17 = vpack.c.bf16 %v587_v8, %v586_v13 }
 0x18f   :  { %660 = vmatpush.bf16.msrb.mxu3 %v595_v17 }
 0x193   :  { %661 = vmatpush.bf16.msrb.mxu3 %v594_v24  ;;  %922 = vmatmul.bf16.gmra.mxu1 %v592_v25 }
 0x197   :  { %662 = vmatpush.bf16.msrb.mxu3 %v593_v22 }
 0x19b   :  { %663 = vmatpush.bf16.msrb.mxu3 %v592_v25 }
 0x19f   :  { %664 = vmatpush.bf16.msrb.mxu3 %v591_v58 }
 0x1a3   :  { %665 = vmatpush.bf16.msrb.mxu3 %v590_v45  ;;  %927 = vmatmul.bf16.gmra.mxu1 %v593_v22 }
 0x1a7   :  { %666 = vmatpush.bf16.msrb.mxu3 %v1608_v33  ;;  %v1264_v33 = vld [vmem:[#allocation12 + $0x28] sm:$0xff] }
 0x1a8   :  { %799 = vmatpush.bf16.msrb.mxu0 %v1264_v33 }
 0x1ab   :  { %667 = vmatpush.bf16.msrb.mxu3 %v1603_v20  ;;  %v1263_v20 = vld [vmem:[#allocation12 + $0x20] sm:$0xff] }
 0x1ac   :  { %800 = vmatpush.bf16.msrb.mxu0 %v1263_v20 }
 0x1ae   :  { %668 = vmatmul.bf16.vlgmr.msrb.gmra.mxu3 %v1243_v27 }
 0x1b0   :  { %801 = vmatpush.bf16.msrb.mxu0 %v1262_v35 }
 0x1b3   :  { %932 = vmatmul.bf16.gmra.mxu1 %v594_v24 }
 0x1b4   :  { %802 = vmatpush.bf16.msrb.mxu0 %v1261_v37 }
 0x1b8   :  { %803 = vmatpush.bf16.msrb.mxu0 %v1260_v38 }
 0x1bc   :  { %804 = vmatpush.bf16.msrb.mxu0 %v1259_v39 }
 0x1be   :  { %673 = vmatmul.bf16.gmra.mxu3 %v1244_v11 }
 0x1c3   :  { %937 = vmatmul.bf16.gmra.mxu1 %v595_v17 }
 0x1ce   :  { %678 = vmatmul.bf16.gmra.mxu3 %v1245_v28 }
 0x1d0   :  { %v903_v62 = vpop.f32.mrf.mxu1 }
 0x1d8   :  { %v905_v0 = vpop.f32.mrf.mxu1 }
 0x1de   :  { %683 = vmatmul.bf16.gmra.mxu3 %v1246_v29 }
 0x1e0   :  { %v908_v3 = vpop.f32.mrf.mxu1 }
 0x1e8   :  { %v910_v5 = vpop.f32.mrf.mxu1 }
 0x1ee   :  { %688 = vmatmul.bf16.gmra.mxu3 %v1247_v30 }
 0x1f0   :  { %v913_v13 = vpop.f32.mrf.mxu1 }
 0x1f8   :  { %v915_v17 = vpop.f32.mrf.mxu1 }
 0x1fe   :  { %693 = vmatmul.bf16.gmra.mxu3 %v1248_v32 }
 0x200   :  { %v918_v23 = vpop.f32.mrf.mxu1 }
 0x208   :  { %v920_v22 = vpop.f32.mrf.mxu1 }
 0x20e   :  { %698 = vmatmul.bf16.gmra.mxu3 %v1249_v36 }
 0x210   :  { %v923_v31 = vpop.f32.mrf.mxu1 }
 0x218   :  { %v925_v35 = vpop.f32.mrf.mxu1 }
 0x21e   :  { %703 = vmatmul.bf16.gmra.mxu3 %v1250_v40 }
 0x220   :  { %v928_v39 = vpop.f32.mrf.mxu1 }
 0x231   :  { %v669_v41 = vpop.f32.mrf.mxu3 }
 0x239   :  { %v671_v42 = vpop.f32.mrf.mxu3 }
 0x23a   :  { %v725_v43 = vpack.c.bf16 %v671_v42, %v669_v41 }
 0x23c   :  { %805 = vmatmul.bf16.vlgmr.msrb.gmra.mxu0 %v725_v43  ;;  %v930_v43 = vpop.f32.mrf.mxu1 }
 0x241   :  { %v674_v44 = vpop.f32.mrf.mxu3 }
 0x249   :  { %v676_v45 = vpop.f32.mrf.mxu3 }
 0x24a   :  { %v726_v46 = vpack.c.bf16 %v676_v45, %v674_v44 }
 0x24c   :  { %810 = vmatmul.bf16.gmra.mxu0 %v726_v46 }
 0x251   :  { %v679_v47 = vpop.f32.mrf.mxu3 }
 0x259   :  { %v681_v48 = vpop.f32.mrf.mxu3 }
 0x25a   :  { %v727_v49 = vpack.c.bf16 %v681_v48, %v679_v47 }
 0x25c   :  { %815 = vmatmul.bf16.gmra.mxu0 %v727_v49  ;;  %v933_v49 = vpop.f32.mrf.mxu1 }
 0x261   :  { %v684_v50 = vpop.f32.mrf.mxu3 }
 0x269   :  { %v686_v51 = vpop.f32.mrf.mxu3 }
 0x26a   :  { %v728_v52 = vpack.c.bf16 %v686_v51, %v684_v50 }
 0x26c   :  { %820 = vmatmul.bf16.gmra.mxu0 %v728_v52 }
 0x271   :  { %v689_v53 = vpop.f32.mrf.mxu3 }
 0x279   :  { %v691_v54 = vpop.f32.mrf.mxu3 }
 0x27a   :  { %v729_v55 = vpack.c.bf16 %v691_v54, %v689_v53  ;;  %v935_v54 = vpop.f32.mrf.mxu1 }
 0x27c   :  { %825 = vmatmul.bf16.gmra.mxu0 %v729_v55 }
 0x281   :  { %v694_v56 = vpop.f32.mrf.mxu3 }
 0x289   :  { %v696_v57 = vpop.f32.mrf.mxu3 }
 0x28a   :  { %v730_v58 = vpack.c.bf16 %v696_v57, %v694_v56 }
 0x28c   :  { %830 = vmatmul.bf16.gmra.mxu0 %v730_v58  ;;  %v938_v58 = vpop.f32.mrf.mxu1 }
 0x291   :  { %v699_v59 = vpop.f32.mrf.mxu3 }
 0x299   :  { %v701_v60 = vpop.f32.mrf.mxu3 }
 0x29a   :  { %v731_v61 = vpack.c.bf16 %v701_v60, %v699_v59 }
 0x29c   :  { %835 = vmatmul.bf16.gmra.mxu0 %v731_v61 }
 0x2a1   :  { %v704_v63 = vpop.f32.mrf.mxu3 }
 0x2a9   :  { %v706_v1 = vpop.f32.mrf.mxu3 }
 0x2aa   :  { %v732_v2 = vpack.c.bf16 %v706_v1, %v704_v63 }
 0x2ac   :  { %840 = vmatmul.bf16.gmra.mxu0 %v732_v2 }
 0x2b9   :  { %v806_v6 = vpop.f32.mrf.mxu0 }
 0x2ba   :  { %v904_v7 = vadd.f32 %v903_v62, %v806_v6  ;;  %v940_v62 = vpop.f32.mrf.mxu1 }
 0x2bc   :  { %v947_v9 = vadd.f32 %v1628_v4, %v904_v7 }
 0x2be   :  { %963 = vst [vmem:[%s1703_s9] sm:$0xff] %v947_v9 }
 0x2c1   :  { %v808_v10 = vpop.f32.mrf.mxu0 }
 0x2c2   :  { %v906_v12 = vadd.f32 %v905_v0, %v808_v10 }
 0x2c4   :  { %v948_v8 = vadd.f32 %v1628_v4, %v906_v12 }
 0x2c6   :  { %964 = vst [vmem:[%s1703_s9 + $0x8] sm:$0xff] %v948_v8 }
 0x2c9   :  { %v811_v14 = vpop.f32.mrf.mxu0 }
 0x2ca   :  { %v909_v15 = vadd.f32 %v908_v3, %v811_v14 }
 0x2cc   :  { %v949_v16 = vadd.f32 %v1628_v4, %v909_v15 }
 0x2ce   :  { %965 = vst [vmem:[%s1703_s9 + $0x10] sm:$0xff] %v949_v16 }
 0x2d1   :  { %v813_v18 = vpop.f32.mrf.mxu0 }
 0x2d2   :  { %v911_v19 = vadd.f32 %v910_v5, %v813_v18 }
 0x2d4   :  { %v950_v21 = vadd.f32 %v1628_v4, %v911_v19 }
 0x2d6   :  { %966 = vst [vmem:[%s1703_s9 + $0x18] sm:$0xff] %v950_v21 }
 0x2d9   :  { %v816_v24 = vpop.f32.mrf.mxu0 }
 0x2da   :  { %v914_v25 = vadd.f32 %v913_v13, %v816_v24 }
 0x2dc   :  { %v951_v26 = vadd.f32 %v1628_v4, %v914_v25 }
 0x2de   :  { %967 = vst [vmem:[%s1703_s9 + $0x20] sm:$0xff] %v951_v26 }
 0x2e1   :  { %v818_v27 = vpop.f32.mrf.mxu0 }
 0x2e2   :  { %v916_v11 = vadd.f32 %v915_v17, %v818_v27 }
 0x2e4   :  { %v952_v28 = vadd.f32 %v1628_v4, %v916_v11 }
 0x2e6   :  { %968 = vst [vmem:[%s1703_s9 + $0x28] sm:$0xff] %v952_v28 }
 0x2e9   :  { %v821_v29 = vpop.f32.mrf.mxu0 }
 0x2ea   :  { %v919_v30 = vadd.f32 %v918_v23, %v821_v29 }
 0x2ec   :  { %v953_v32 = vadd.f32 %v1628_v4, %v919_v30 }
 0x2ee   :  { %969 = vst [vmem:[%s1703_s9 + $0x30] sm:$0xff] %v953_v32 }
 0x2f1   :  { %v823_v34 = vpop.f32.mrf.mxu0 }
 0x2f2   :  { %v921_v33 = vadd.f32 %v920_v22, %v823_v34 }
 0x2f4   :  { %v954_v20 = vadd.f32 %v1628_v4, %v921_v33 }
 0x2f6   :  { %970 = vst [vmem:[%s1703_s9 + $0x38] sm:$0xff] %v954_v20 }
 0x2f9   :  { %v826_v36 = vpop.f32.mrf.mxu0 }
 0x2fa   :  { %v924_v37 = vadd.f32 %v923_v31, %v826_v36 }
 0x2fc   :  { %v955_v38 = vadd.f32 %v1628_v4, %v924_v37 }
 0x2fe   :  { %971 = vst [vmem:[%s1703_s9 + $0x40] sm:$0xff] %v955_v38 }
 0x301   :  { %v828_v40 = vpop.f32.mrf.mxu0 }
 0x302   :  { %v926_v41 = vadd.f32 %v925_v35, %v828_v40 }
 0x304   :  { %v956_v42 = vadd.f32 %v1628_v4, %v926_v41 }
 0x306   :  { %972 = vst [vmem:[%s1703_s9 + $0x48] sm:$0xff] %v956_v42 }
 0x309   :  { %v831_v44 = vpop.f32.mrf.mxu0 }
 0x30a   :  { %v929_v45 = vadd.f32 %v928_v39, %v831_v44 }
 0x30c   :  { %v957_v46 = vadd.f32 %v1628_v4, %v929_v45 }
 0x30e   :  { %973 = vst [vmem:[%s1703_s9 + $0x50] sm:$0xff] %v957_v46 }
 0x311   :  { %v833_v47 = vpop.f32.mrf.mxu0 }
 0x312   :  { %v931_v48 = vadd.f32 %v930_v43, %v833_v47 }
 0x314   :  { %v958_v50 = vadd.f32 %v1628_v4, %v931_v48 }
 0x316   :  { %974 = vst [vmem:[%s1703_s9 + $0x58] sm:$0xff] %v958_v50 }
 0x319   :  { %v836_v51 = vpop.f32.mrf.mxu0 }
 0x31a   :  { %v934_v52 = vadd.f32 %v933_v49, %v836_v51 }
 0x31c   :  { %v959_v53 = vadd.f32 %v1628_v4, %v934_v52 }
 0x31e   :  { %975 = vst [vmem:[%s1703_s9 + $0x60] sm:$0xff] %v959_v53 }
 0x321   :  { %v838_v55 = vpop.f32.mrf.mxu0 }
 0x322   :  { %v936_v56 = vadd.f32 %v935_v54, %v838_v55 }
 0x324   :  { %v960_v57 = vadd.f32 %v1628_v4, %v936_v56 }
 0x326   :  { %976 = vst [vmem:[%s1703_s9 + $0x68] sm:$0xff] %v960_v57 }
 0x329   :  { %v841_v59 = vpop.f32.mrf.mxu0 }
 0x32a   :  { %v939_v60 = vadd.f32 %v938_v58, %v841_v59 }
 0x32c   :  { %v961_v61 = vadd.f32 %v1628_v4, %v939_v60 }
 0x32e   :  { %977 = vst [vmem:[%s1703_s9 + $0x70] sm:$0xff] %v961_v61 }
 0x331   :  { %v843_v63 = vpop.f32.mrf.mxu0 }
 0x332   :  { %v941_v0 = vadd.f32 %v940_v62, %v843_v63 }
 0x334   :  { %v962_v1 = vadd.f32 %v1628_v4, %v941_v0 }
 0x336   :  { %978 = vst [vmem:[%s1703_s9 + $0x78] sm:$0xff] %v962_v1 }
 0x337   :  { %983 = vsyncpa [#allocation3], 1 }
 0x338   :  { %984 = vsyncpa [#allocation5], 1 }
 0x339   :  { %985 = vsyncpa [#allocation8], 1 }
 0x33a   :  { %986 = vsyncpa [#allocation11], 1 }

</bundles_post_ra>
